<compile_context>
chip_gen: v6e
topology: v6e:2x2x1
jax: 0.10.0
libtpu: 0.0.40
codegen_flags: <defaults>
</compile_context>

<pallas_src>
import functools

import jax
import jax.numpy as jnp
from jax.experimental import pallas as pl
from jax.experimental.pallas import tpu as pltpu


def _fc1_relu(x_ref, w1_ref, b1_ref):
    # (TB, S) @ (S, H) on the MXU; K is tiny but the vmatmul slot is idle here.
    h = jnp.dot(x_ref[...], w1_ref[...], preferred_element_type=jnp.float32)
    return jnp.maximum(h + b1_ref[...], 0.0)


def policy_net_kernel_a2(x_ref, w1_ref, b1_ref, w2_ref, b2_ref, o_ref):
    """action_dim == 2: softmax via a single EUP tanh, no cross-lane reductions."""
    h = _fc1_relu(x_ref, w1_ref, b1_ref)                     # (TB, H)
    w2 = w2_ref[...]                                         # (H, 2)
    b2 = b2_ref[...]                                         # (1, 2)
    wd = w2[:, 0:1] - w2[:, 1:2]                             # (H, 1)
    bd = b2[:, 0:1] - b2[:, 1:2]                             # (1, 1)
    d = jnp.dot(h, wd, preferred_element_type=jnp.float32) + bd   # (TB, 1) = l0 - l1
    p0 = 0.5 * (jnp.tanh(0.5 * d) + 1.0)                     # sigmoid(d), exact-ish
    o_ref[...] = jnp.concatenate([p0, 1.0 - p0], axis=1).astype(o_ref.dtype)


def policy_net_kernel_general(x_ref, w1_ref, b1_ref, w2_ref, b2_ref, o_ref):
    """Any action_dim: exact, numerically-stable softmax (no approx reciprocal)."""
    h = _fc1_relu(x_ref, w1_ref, b1_ref)                     # (TB, H)
    logits = jnp.dot(h, w2_ref[...], preferred_element_type=jnp.float32) + b2_ref[...]
    m = jnp.max(logits, axis=1, keepdims=True)
    e = jnp.exp(logits - m)
    o_ref[...] = (e / jnp.sum(e, axis=1, keepdims=True)).astype(o_ref.dtype)


@functools.partial(jax.jit, static_argnames=("block_b",))
def policy_net_forward(x, w1, b1, w2, b2, *, block_b=256):
    """softmax(relu(x @ w1 + b1) @ w2 + b2, axis=1) via one Pallas call."""
    B, S = x.shape
    H, A = w2.shape

    # Batch tile: several grid steps per TensorCore at rollout batch sizes
    # (v7x has 2 TCs); tiny batches round up to the 8-sublane minimum.
    TB = block_b if B >= block_b else max(8, ((B + 7) // 8) * 8)
    Bp = pl.cdiv(B, TB) * TB
    if Bp != B:
        x = jnp.pad(x, ((0, Bp - B), (0, 0)))

    kernel = policy_net_kernel_a2 if A == 2 else policy_net_kernel_general

    out = pl.pallas_call(
        kernel,
        out_shape=jax.ShapeDtypeStruct((Bp, A), jnp.float32),
        grid_spec=pltpu.PrefetchScalarGridSpec(
            num_scalar_prefetch=0,
            grid=(Bp // TB,),
            in_specs=[
                pl.BlockSpec((TB, S), lambda i: (i, 0)),   # x: streamed
                pl.BlockSpec((S, H), lambda i: (0, 0)),    # w1: VMEM-resident
                pl.BlockSpec((1, H), lambda i: (0, 0)),    # b1: VMEM-resident
                pl.BlockSpec((H, A), lambda i: (0, 0)),    # w2: VMEM-resident
                pl.BlockSpec((1, A), lambda i: (0, 0)),    # b2: VMEM-resident
            ],
            # Narrow output: block last dim == full array dim (A), no padding.
            out_specs=pl.BlockSpec((TB, A), lambda i: (i, 0)),
        ),
        compiler_params=pltpu.CompilerParams(
            dimension_semantics=("parallel",),
        ),
    )(x, w1, b1, w2, b2)
    return out[:B] if Bp != B else out


def init_params(key, state_dim, hidden_dim, action_dim):
    # Mimics torch.nn.Linear init: U(-1/sqrt(in), 1/sqrt(in)); weights stored
    # transposed (in, out) so the kernel computes x @ W.
    k1, k2, k3, k4 = jax.random.split(key, 4)
    bound1 = 1.0 / (state_dim ** 0.5)
    bound2 = 1.0 / (hidden_dim ** 0.5)
    w1 = jax.random.uniform(k1, (state_dim, hidden_dim), jnp.float32, -bound1, bound1)
    b1 = jax.random.uniform(k2, (1, hidden_dim), jnp.float32, -bound1, bound1)
    w2 = jax.random.uniform(k3, (hidden_dim, action_dim), jnp.float32, -bound2, bound2)
    b2 = jax.random.uniform(k4, (1, action_dim), jnp.float32, -bound2, bound2)
    return w1, b1, w2, b2


def _reference(x, w1, b1, w2, b2):
    h = jnp.maximum(x @ w1 + b1, 0.0)
    return jax.nn.softmax(h @ w2 + b2, axis=1)


if __name__ == "__main__":
    state_dim = 4      # CartPole-v1 observation dim
    hidden_dim = 128
    action_dim = 2     # CartPole-v1 action count

    key = jax.random.PRNGKey(0)
    kx, kp, kr, kg = jax.random.split(key, 4)
    w1, b1, w2, b2 = init_params(kp, state_dim, hidden_dim, action_dim)

    # --- small, spec-sized check (single grid step, A == 2 path) ------------
    batch = 8
    x = jax.random.normal(kx, (batch, state_dim), jnp.float32)
    out = jax.block_until_ready(policy_net_forward(x, w1, b1, w2, b2))
    ref = _reference(x, w1, b1, w2, b2)
    assert out.shape == (batch, action_dim)
    assert jnp.allclose(out, ref, atol=1e-3, rtol=1e-3)
    assert jnp.allclose(jnp.sum(out, axis=1), 1.0, atol=1e-4)

    # --- rollout-scale check (multiple batch tiles, non-multiple batch) -----
    big_batch = 1000   # pads to 1024 -> grid of 4 tiles of 256
    xb = jax.random.normal(kr, (big_batch, state_dim), jnp.float32)
    outb = jax.block_until_ready(policy_net_forward(xb, w1, b1, w2, b2))
    refb = _reference(xb, w1, b1, w2, b2)
    assert outb.shape == (big_batch, action_dim)
    assert jnp.allclose(outb, refb, atol=1e-3, rtol=1e-3)
    assert jnp.allclose(jnp.sum(outb, axis=1), 1.0, atol=1e-4)

    # --- general (A != 2) softmax path check ---------------------------------
    a3 = 3
    w1g, b1g, w2g, b2g = init_params(kp, state_dim, hidden_dim, a3)
    xg = jax.random.normal(kg, (16, state_dim), jnp.float32)
    outg = jax.block_until_ready(policy_net_forward(xg, w1g, b1g, w2g, b2g))
    refg = _reference(xg, w1g, b1g, w2g, b2g)
    assert outg.shape == (16, a3)
    assert jnp.allclose(outg, refg, atol=1e-3, rtol=1e-3)
    assert jnp.allclose(jnp.sum(outg, axis=1), 1.0, atol=1e-4)

    print("KERNEL_OK")
</pallas_src>

<mosaic_0001>
module attributes {stable_mosaic.version = 11 : i64} {
  func.func @policy_net_kernel_a2(%arg0: i32, %arg1: memref<8x4xf32, #tpu.memory_space<vmem>>, %arg2: memref<4x128xf32, #tpu.memory_space<vmem>>, %arg3: memref<1x128xf32, #tpu.memory_space<vmem>>, %arg4: memref<128x2xf32, #tpu.memory_space<vmem>>, %arg5: memref<1x2xf32, #tpu.memory_space<vmem>>, %arg6: memref<8x2xf32, #tpu.memory_space<vmem>>) attributes {dimension_semantics = [#tpu.dimension_semantics<parallel>], iteration_bounds = array<i64: 1>, scalar_prefetch = 0 : i64, scratch_operands = 0 : i64, tpu.core_type = #tpu.core_type<tc>, window_params = [{transform_indices = @transform_0, window_bounds = array<i64: 8, 4>}, {pipeline_mode = #tpu.pipeline_mode<synchronous>, transform_indices = @transform_1, window_bounds = array<i64: 4, 128>}, {pipeline_mode = #tpu.pipeline_mode<synchronous>, transform_indices = @transform_2, window_bounds = array<i64: 1, 128>}, {pipeline_mode = #tpu.pipeline_mode<synchronous>, transform_indices = @transform_3, window_bounds = array<i64: 128, 2>}, {pipeline_mode = #tpu.pipeline_mode<synchronous>, transform_indices = @transform_4, window_bounds = array<i64: 1, 2>}, {transform_indices = @transform_5, window_bounds = array<i64: 8, 2>}]} {
    %c0 = arith.constant 0 : index
    %c0_0 = arith.constant 0 : index
    %0 = vector.load %arg1[%c0, %c0_0] : memref<8x4xf32, #tpu.memory_space<vmem>>, vector<8x4xf32>
    %c0_1 = arith.constant 0 : index
    %c0_2 = arith.constant 0 : index
    %1 = vector.load %arg2[%c0_1, %c0_2] : memref<4x128xf32, #tpu.memory_space<vmem>>, vector<4x128xf32>
    %cst = arith.constant dense<0.000000e+00> : vector<8x128xf32>
    %2 = tpu.matmul %0, %1, %cst {dimension_numbers = #tpu.dot_dimension_numbers<[1], [0], [0], [1], [0, 0, 1, 1], [], []>} : vector<8x4xf32>, vector<4x128xf32>, vector<8x128xf32> -> vector<8x128xf32>
    %c0_3 = arith.constant 0 : index
    %c0_4 = arith.constant 0 : index
    %3 = vector.load %arg3[%c0_3, %c0_4] : memref<1x128xf32, #tpu.memory_space<vmem>>, vector<1x128xf32>
    %4 = vector.broadcast %3 : vector<1x128xf32> to vector<8x128xf32>
    %5 = arith.addf %2, %4 : vector<8x128xf32>
    %cst_5 = arith.constant 0.000000e+00 : f32
    %6 = vector.broadcast %cst_5 : f32 to vector<8x128xf32>
    %7 = arith.maximumf %5, %6 : vector<8x128xf32>
    %c0_6 = arith.constant 0 : index
    %c0_7 = arith.constant 0 : index
    %8 = vector.load %arg4[%c0_6, %c0_7] : memref<128x2xf32, #tpu.memory_space<vmem>>, vector<128x2xf32>
    %c0_8 = arith.constant 0 : index
    %c0_9 = arith.constant 0 : index
    %9 = vector.load %arg5[%c0_8, %c0_9] : memref<1x2xf32, #tpu.memory_space<vmem>>, vector<1x2xf32>
    %10 = vector.extract_strided_slice %8 {offsets = [0, 0], sizes = [128, 1], strides = [1, 1]} : vector<128x2xf32> to vector<128x1xf32>
    %11 = vector.extract_strided_slice %8 {offsets = [0, 1], sizes = [128, 1], strides = [1, 1]} : vector<128x2xf32> to vector<128x1xf32>
    %12 = arith.subf %10, %11 : vector<128x1xf32>
    %13 = vector.extract_strided_slice %9 {offsets = [0, 0], sizes = [1, 1], strides = [1, 1]} : vector<1x2xf32> to vector<1x1xf32>
    %14 = vector.extract_strided_slice %9 {offsets = [0, 1], sizes = [1, 1], strides = [1, 1]} : vector<1x2xf32> to vector<1x1xf32>
    %15 = arith.subf %13, %14 : vector<1x1xf32>
    %cst_10 = arith.constant dense<0.000000e+00> : vector<8x1xf32>
    %16 = tpu.matmul %7, %12, %cst_10 {dimension_numbers = #tpu.dot_dimension_numbers<[1], [0], [0], [1], [0, 0, 1, 1], [], []>} : vector<8x128xf32>, vector<128x1xf32>, vector<8x1xf32> -> vector<8x1xf32>
    %17 = vector.broadcast %15 : vector<1x1xf32> to vector<8x1xf32>
    %18 = arith.addf %16, %17 : vector<8x1xf32>
    %cst_11 = arith.constant 5.000000e-01 : f32
    %19 = vector.broadcast %cst_11 : f32 to vector<8x1xf32>
    %20 = arith.mulf %19, %18 : vector<8x1xf32>
    %21 = math.tanh %20 : vector<8x1xf32>
    %cst_12 = arith.constant 1.000000e+00 : f32
    %22 = vector.broadcast %cst_12 : f32 to vector<8x1xf32>
    %23 = arith.addf %21, %22 : vector<8x1xf32>
    %cst_13 = arith.constant 5.000000e-01 : f32
    %24 = vector.broadcast %cst_13 : f32 to vector<8x1xf32>
    %25 = arith.mulf %24, %23 : vector<8x1xf32>
    %cst_14 = arith.constant 1.000000e+00 : f32
    %26 = vector.broadcast %cst_14 : f32 to vector<8x1xf32>
    %27 = arith.subf %26, %25 : vector<8x1xf32>
    %28 = tpu.concatenate %25, %27 in 1 : vector<8x1xf32>, vector<8x1xf32> -> vector<8x2xf32>
    %c0_15 = arith.constant 0 : index
    %c0_16 = arith.constant 0 : index
    %29 = vector.load %arg6[%c0_15, %c0_16] : memref<8x2xf32, #tpu.memory_space<vmem>>, vector<8x2xf32>
    tpu.vector_store %arg6[%c0_15, %c0_16], %28 {strides = array<i32>} : memref<8x2xf32, #tpu.memory_space<vmem>>, vector<8x2xf32>,
    return
  }
  func.func @transform_0(%arg0: i32) -> (i32, i32) {
    %c0_i32 = arith.constant 0 : i32
    %c0_i32_0 = arith.constant 0 : i32
    return %arg0, %c0_i32 : i32, i32
  }
  func.func @transform_1(%arg0: i32) -> (i32, i32) {
    %c0_i32 = arith.constant 0 : i32
    %c0_i32_0 = arith.constant 0 : i32
    %c0_i32_1 = arith.constant 0 : i32
    return %c0_i32, %c0_i32_0 : i32, i32
  }
  func.func @transform_2(%arg0: i32) -> (i32, i32) {
    %c0_i32 = arith.constant 0 : i32
    %c0_i32_0 = arith.constant 0 : i32
    %c0_i32_1 = arith.constant 0 : i32
    return %c0_i32, %c0_i32_0 : i32, i32
  }
  func.func @transform_3(%arg0: i32) -> (i32, i32) {
    %c0_i32 = arith.constant 0 : i32
    %c0_i32_0 = arith.constant 0 : i32
    %c0_i32_1 = arith.constant 0 : i32
    return %c0_i32, %c0_i32_0 : i32, i32
  }
  func.func @transform_4(%arg0: i32) -> (i32, i32) {
    %c0_i32 = arith.constant 0 : i32
    %c0_i32_0 = arith.constant 0 : i32
    %c0_i32_1 = arith.constant 0 : i32
    return %c0_i32, %c0_i32_0 : i32, i32
  }
  func.func @transform_5(%arg0: i32) -> (i32, i32) {
    %c0_i32 = arith.constant 0 : i32
    %c0_i32_0 = arith.constant 0 : i32
    return %arg0, %c0_i32 : i32, i32
  }
}

</mosaic_0001>

<bundles_post_ra>
// kernel: policy_net_forward.1
= control target key start
LH: loop header
LB: loop body
LE: loop exit
PB: predicated region body
PF: predicated region fallthrough
CT: control target
= control target key end

     0   :  { %vm33_vm0 = vcmask 1043456   ;;  %vm29_vm1 = vcmask 31744   ;;  %v371_v0 = vmov 0.0   ;;  %vm372_vm2 = vmmov 0   ;;  %s373_s24 = smov 127   ;;  %s528_s1 = inlined_call_operand.vmem [shape: f32[4,128], index: 1, kind: input, shape index: {}]   ;;  %s529_s0 = inlined_call_operand.vmem [shape: f32[8,4], index: 0, kind: input, shape index: {}]   ;;  %s530_s3 = inlined_call_operand.vmem [shape: f32[128,2], index: 3, kind: input, shape index: {}]   ;;  %s531_s4 = inlined_call_operand.vmem [shape: f32[1,2], index: 4, kind: input, shape index: {}]   ;;  %s532_s2 = inlined_call_operand.vmem [shape: f32[1,128], index: 2, kind: input, shape index: {}]   ;;  %s533_s5 = inlined_call_operand.vmem [shape: f32[8,2], index: 5, kind: output, shape index: {}]  }
   0x1   :  { %325 = vmatprep.subr.mxu0 %v371_v0  ;;  %v21_v1 = vld [vmem:[%s528_s1] sm:$0xf]  ;;  %327 = vmatprep.mubr.msk.f32.mxu0 %vm372_vm2, %v371_v0  ;;  %v123_v3 = vld [vmem:[%s530_s3 + $0x78] sm:$0xff]  ;;  %v121_v4 = vld [vmem:[%s530_s3 + $0x68] sm:$0xff]  ;;  %v211_v57 = vlaneseq  ;;  %vm295_vm3 = vcmask 7168   ;;  %vm297_vm4 = vcmask 15360  }
   0x2   :  { %v20_v2 = vld [vmem:[%s529_s0] sm:$0xff]  ;;  %326 = vmatpush3.msk.msra.mxu0 %vm33_vm0, %v21_v1  ;;  %171 = vrot.lane.b32.xlu0 %v123_v3, %s373_s24  ;;  %v122_v5 = vld [vmem:[%s530_s3 + $0x70] sm:$0xff]  ;;  %v119_v7 = vld [vmem:[%s530_s3 + $0x58] sm:$0xff] }
   0x3   :  { %328 = vmatmul.mubr.msk.f32.vlgmr.msra.gmra.mxu0 %vm29_vm1, %v20_v2  ;;  %167 = vrot.lane.b32.xlu1 %v121_v4, %s373_s24  ;;  %v120_v6 = vld [vmem:[%s530_s3 + $0x60] sm:$0xff]  ;;  %v118_v8 = vld [vmem:[%s530_s3 + $0x50] sm:$0xff]  ;;  %v117_v9 = vld [vmem:[%s530_s3 + $0x48] sm:$0xff]  ;;  %v212_v58 = vshrl.u32 %v211_v57, 7 }
   0x4   :  { %330 = vmatprep.subr.mxu1 %v371_v0  ;;  %362 = vmatprep.mubr.msk.f32.mxu1 %vm372_vm2, %v371_v0  ;;  %v116_v10 = vld [vmem:[%s530_s3 + $0x40] sm:$0xff]  ;;  %v115_v11 = vld [vmem:[%s530_s3 + $0x38] sm:$0xff]  ;;  %v114_v12 = vld [vmem:[%s530_s3 + $0x30] sm:$0xff] }
   0x5   :  { %v113_v13 = vld [vmem:[%s530_s3 + $0x28] sm:$0xff]  ;;  %v461_v14 = vld [vmem:[%s530_s3 + $0x20] sm:$0xff]  ;;  %v469_v15 = vld [vmem:[%s530_s3 + $0x18] sm:$0xff]  ;;  %v213_v61 = vsub.s32 0, %v212_v58 }
   0x6   :  { %169 = vrot.lane.b32.xlu0 %v122_v5, %s373_s24  ;;  %v474_v16 = vld [vmem:[%s530_s3 + $0x10] sm:$0xff]  ;;  %v483_v17 = vld [vmem:[%s530_s3 + $0x8] sm:$0xff]  ;;  %v488_v18 = vld [vmem:[%s530_s3] sm:$0xff] }
   0x7   :  { %165 = vrot.lane.b32.xlu1 %v120_v6, %s373_s24  ;;  %v497_v19 = vld [vmem:[%s531_s4] sm:$0x1] }
   0x8   :  { %v303_v52 = vld [vmem:[%s532_s2] ss:$0 sm:$0xff]  ;;  %s374_s2 = smov 1  }
   0xa   :  { %163 = vrot.lane.b32.xlu0 %v119_v7, %s373_s24 }
   0xb   :  { %161 = vrot.lane.b32.xlu1 %v118_v8, %s373_s24 }
   0xe   :  { %159 = vrot.lane.b32.xlu0 %v117_v9, %s373_s24 }
   0xf   :  { %157 = vrot.lane.b32.xlu1 %v116_v10, %s373_s24 }
  0x12   :  { %155 = vrot.lane.b32.xlu0 %v115_v11, %s373_s24 }
  0x13   :  { %153 = vrot.lane.b32.xlu1 %v114_v12, %s373_s24 }
  0x16   :  { %151 = vrot.lane.b32.xlu0 %v113_v13, %s373_s24 }
  0x17   :  { %149 = vrot.lane.b32.xlu1 %v461_v14, %s373_s24 }
  0x1a   :  { %147 = vrot.lane.b32.xlu0 %v469_v15, %s373_s24 }
  0x1b   :  { %145 = vrot.lane.b32.xlu1 %v474_v16, %s373_s24 }
  0x1e   :  { %143 = vrot.lane.b32.xlu0 %v483_v17, %s373_s24 }
  0x1f   :  { %141 = vrot.lane.b32.xlu1 %v488_v18, %s373_s24 }
  0x22   :  { %206 = vrot.lane.b32.xlu0 %v497_v19, %s373_s24 }
  0x74   :  { %v172_v20 = vpop.permute.xlu0 %171 }
  0x75   :  { %v204_v21 = vsub.f32 %v123_v3, %v172_v20  ;;  %v168_v22 = vpop.permute.xlu1 %167 }
  0x76   :  { %v202_v25 = vsub.f32 %v121_v4, %v168_v22 }
  0x77   :  { %331 = vmatpush3.msra.mxu1 %v204_v21 }
  0x78   :  { %v170_v23 = vpop.permute.xlu0 %169  ;;  %332 = vmatprep.subr.mxu1 %v371_v0 }
  0x79   :  { %v203_v24 = vsub.f32 %v122_v5, %v170_v23  ;;  %v166_v26 = vpop.permute.xlu1 %165 }
  0x7a   :  { %v201_v27 = vsub.f32 %v120_v6, %v166_v26 }
  0x7b   :  { %333 = vmatpush3.msra.mxu1 %v203_v24 }
  0x7c   :  { %334 = vmatprep.subr.mxu1 %v371_v0  ;;  %v164_v28 = vpop.permute.xlu0 %163 }
  0x7d   :  { %335 = vmatpush3.msra.mxu1 %v202_v25  ;;  %v200_v29 = vsub.f32 %v119_v7, %v164_v28  ;;  %v162_v30 = vpop.permute.xlu1 %161 }
  0x7e   :  { %336 = vmatprep.subr.mxu1 %v371_v0  ;;  %v199_v31 = vsub.f32 %v118_v8, %v162_v30 }
  0x7f   :  { %337 = vmatpush3.msra.mxu1 %v201_v27 }
  0x80   :  { %338 = vmatprep.subr.mxu1 %v371_v0  ;;  %v160_v32 = vpop.permute.xlu0 %159 }
  0x81   :  { %339 = vmatpush3.msra.mxu1 %v200_v29  ;;  %v198_v33 = vsub.f32 %v117_v9, %v160_v32  ;;  %v158_v34 = vpop.permute.xlu1 %157 }
  0x82   :  { %340 = vmatprep.subr.mxu1 %v371_v0  ;;  %v197_v35 = vsub.f32 %v116_v10, %v158_v34 }
  0x83   :  { %341 = vmatpush3.msra.mxu1 %v199_v31 }
  0x84   :  { %342 = vmatprep.subr.mxu1 %v371_v0  ;;  %v156_v36 = vpop.permute.xlu0 %155 }
  0x85   :  { %343 = vmatpush3.msra.mxu1 %v198_v33  ;;  %v196_v37 = vsub.f32 %v115_v11, %v156_v36  ;;  %v154_v38 = vpop.permute.xlu1 %153 }
  0x86   :  { %344 = vmatprep.subr.mxu1 %v371_v0  ;;  %v195_v39 = vsub.f32 %v114_v12, %v154_v38 }
  0x87   :  { %345 = vmatpush3.msra.mxu1 %v197_v35 }
  0x88   :  { %346 = vmatprep.subr.mxu1 %v371_v0  ;;  %v152_v40 = vpop.permute.xlu0 %151 }
  0x89   :  { %347 = vmatpush3.msra.mxu1 %v196_v37  ;;  %v194_v41 = vsub.f32 %v113_v13, %v152_v40  ;;  %v150_v42 = vpop.permute.xlu1 %149 }
  0x8a   :  { %348 = vmatprep.subr.mxu1 %v371_v0  ;;  %v193_v43 = vsub.f32 %v461_v14, %v150_v42 }
  0x8b   :  { %349 = vmatpush3.msra.mxu1 %v195_v39 }
  0x8c   :  { %350 = vmatprep.subr.mxu1 %v371_v0  ;;  %v148_v44 = vpop.permute.xlu0 %147 }
  0x8d   :  { %351 = vmatpush3.msra.mxu1 %v194_v41  ;;  %v192_v45 = vsub.f32 %v469_v15, %v148_v44  ;;  %v146_v46 = vpop.permute.xlu1 %145 }
  0x8e   :  { %352 = vmatprep.subr.mxu1 %v371_v0  ;;  %v191_v47 = vsub.f32 %v474_v16, %v146_v46 }
  0x8f   :  { %353 = vmatpush3.msra.mxu1 %v193_v43 }
  0x90   :  { %354 = vmatprep.subr.mxu1 %v371_v0  ;;  %v144_v48 = vpop.permute.xlu0 %143 }
  0x91   :  { %355 = vmatpush3.msra.mxu1 %v192_v45  ;;  %v190_v49 = vsub.f32 %v483_v17, %v144_v48  ;;  %v142_v50 = vpop.permute.xlu1 %141 }
  0x92   :  { %356 = vmatprep.subr.mxu1 %v371_v0  ;;  %v189_v51 = vsub.f32 %v488_v18, %v142_v50 }
  0x93   :  { %357 = vmatpush3.msra.mxu1 %v191_v47 }
  0x94   :  { %358 = vmatprep.subr.mxu1 %v371_v0  ;;  %v207_v59 = vpop.permute.xlu0 %206 }
  0x95   :  { %359 = vmatpush3.msra.mxu1 %v190_v49  ;;  %v209_v60 = vsub.f32 %v497_v19, %v207_v59 }
  0x96   :  { %360 = vmatprep.subr.mxu1 %v371_v0 }
  0x97   :  { %361 = vmatpush3.msra.mxu1 %v189_v51  ;;  %v214_v62 = vrot.slane %v209_v60, %v213_v61 }
  0xc3   :  { %v103_v53 = vpop.f32.mrf.mxu0 }
  0xc4   :  { %v104_v54 = vadd.f32 %v303_v52, %v103_v53 }
  0xc5   :  { %v329_v55 = vpop.f32.mrf.mxu0 }
  0xc6   :  { %v107_v56 = vmax.f32 %v104_v54, 0.0 }
  0xc8   :  { %363 = vmatmul.mubr.f32.vlgmr.msra.gmra.mxu1 %v107_v56 }
 0x188   :  { %v282_v63 = vpop.f32.mrf.mxu1 }
 0x189   :  { %v283_v1 = vadd.f32 %v282_v63, %v214_v62 }
 0x18a   :  { %v364_v0 = vpop.f32.mrf.mxu1 }
 0x18b   :  { %v286_v2 = vmul.f32 0.5, %v283_v1 }
 0x18d   :  { %369 = vtanh.f32 %v286_v2 }
 0x19a   :  { %v370_v3 = vpop.eup %369 }
 0x19b   :  { %v288_v4 = vadd.f32 1.0, %v370_v3 }
 0x19d   :  { %v289_v5 = vmul.f32 0.5, %v288_v4 }
 0x19f   :  { %v290_v6 = vsub.f32 1.0, %v289_v5 }
 0x1a1   :  { %292 = vrot.lane.b32.xlu1 %v290_v6, %s374_s2 }
 0x213   :  { %v293_v7 = vpop.permute.xlu1 %292 }
 0x214   :  { %v296_v8 = vsel %vm295_vm3, %v289_v5, %v293_v7 }
 0x215   :  { %298 = vst.msk [vmem:[%s533_s5] sm:$0xff] %vm297_vm4, %v296_v8 }

</bundles_post_ra>
